<compile_context>
chip_gen: v7x
topology: tpu7x:2x2x1
jax: 0.10.0
libtpu: 0.0.40
codegen_flags: <defaults>
</compile_context>

<pallas_src>
import jax
import jax.numpy as jnp
from jax.experimental import pallas as pl
from jax.experimental.pallas import tpu as pltpu


def _round_up(n, m):
    return ((n + m - 1) // m) * m


def critic_kernel(x_ref, u_ref, w1x_ref, w1u_ref, b1_ref,
                  w2_ref, b2_ref, w3_ref, b3_ref, out_ref):
    # ---- layer 1: h1 = relu(x @ W1x + u @ W1u + b1)  (concat folded away) ----
    x = x_ref[...].astype(jnp.bfloat16)
    u = u_ref[...].astype(jnp.bfloat16)
    h1 = jnp.dot(x, w1x_ref[...], preferred_element_type=jnp.float32)
    h1 = h1 + jnp.dot(u, w1u_ref[...], preferred_element_type=jnp.float32)
    h1 = jnp.maximum(h1 + b1_ref[...], 0.0)

    # ---- layer 2: h2 = relu(h1 @ W2 + b2)  (the big MXU matmul, bf16 in) ----
    h2 = jnp.dot(h1.astype(jnp.bfloat16), w2_ref[...],
                 preferred_element_type=jnp.float32)
    h2 = jnp.maximum(h2 + b2_ref[...], 0.0)

    # ---- layer 3 (N=1): VPU multiply + lane reduce instead of 1-lane MXU ----
    q = jnp.sum(h2 * w3_ref[...], axis=-1, keepdims=True)
    out_ref[...] = (q + b3_ref[0, 0]).astype(out_ref.dtype)


def critic_forward(x, u, params, *, block_batch=512):
    """x: [B, state_dim], u: [B, action_dim] -> q: [B, 1]."""
    w1, b1, w2, b2, w3, b3 = params
    B, state_dim = x.shape
    action_dim = u.shape[1]
    h1 = w1.shape[1]
    h2 = w2.shape[1]

    # Split W1 so the host-side concat([x, u]) is never materialized in HBM,
    # and cast the matmul weights to bf16 (f32 accumulation in-kernel).
    w1x = w1[:state_dim].astype(jnp.bfloat16)
    w1u = w1[state_dim:].astype(jnp.bfloat16)
    w2b = w2.astype(jnp.bfloat16)
    w3row = w3.reshape(1, h2)            # [1, H2] f32 row for the VPU reduce
    b1r = b1.reshape(1, h1)
    b2r = b2.reshape(1, h2)
    b3r = b3.reshape(1, 1)               # scalar, goes to SMEM

    # Batch tile: multiple of 8 (f32 sublane); sized well inside VMEM on
    # v5e/v6e/v7x (TB=512: ~50 KB input, ~0.5 MB per hidden intermediate,
    # ~150 KB resident bf16 weights).
    tb = min(block_batch, max(8, _round_up(B, 8)))
    grid = (pl.cdiv(B, tb),)

    def tile(r, c):       # batch-tiled activations
        return pl.BlockSpec((r, c), lambda i: (i, 0))

    def resident(r, c):   # weights/biases: constant index_map -> fetched once
        return pl.BlockSpec((r, c), lambda i: (0, 0))

    flops = 2 * B * ((state_dim + action_dim) * h1 + h1 * h2 + h2)
    bytes_accessed = (4 * B * (state_dim + action_dim + 1)
                      + 2 * (w1x.size + w1u.size + w2b.size)
                      + 4 * (h1 + h2 + h2 + 1))

    return pl.pallas_call(
        critic_kernel,
        out_shape=jax.ShapeDtypeStruct((B, 1), jnp.float32),
        grid=grid,
        in_specs=[
            tile(tb, state_dim),                                  # x
            tile(tb, action_dim),                                 # u
            resident(state_dim, h1),                              # W1x (bf16)
            resident(action_dim, h1),                             # W1u (bf16)
            resident(1, h1),                                      # b1  (f32)
            resident(h1, h2),                                     # W2  (bf16)
            resident(1, h2),                                      # b2  (f32)
            resident(1, h2),                                      # W3 row (f32)
            pl.BlockSpec(memory_space=pltpu.MemorySpace.SMEM),    # b3 scalar
        ],
        out_specs=tile(tb, 1),
        compiler_params=pltpu.CompilerParams(
            dimension_semantics=("parallel",)),
        cost_estimate=pl.CostEstimate(
            flops=flops, transcendentals=0, bytes_accessed=bytes_accessed),
    )(x, u, w1x, w1u, b1r, w2b, b2r, w3row, b3r)


def init_critic_params(key, state_dim, action_dim, hidden_layer=(256, 256)):
    """Deterministic synthetic init (PyTorch-Linear-style uniform bounds).
    Weights are stored as [in_features, out_features]."""
    dims_in = (state_dim + action_dim, hidden_layer[0], hidden_layer[1])
    dims_out = (hidden_layer[0], hidden_layer[1], 1)
    params = []
    for fin, fout in zip(dims_in, dims_out):
        kw, kb, key = jax.random.split(key, 3)
        bound = 1.0 / jnp.sqrt(jnp.float32(fin))
        w = jax.random.uniform(kw, (fin, fout), jnp.float32, -bound, bound)
        b = jax.random.uniform(kb, (1, fout), jnp.float32, -bound, bound)
        params += [w, b]
    return tuple(params)


if __name__ == "__main__":
    # Small shapes consistent with the module's forward.
    batch = 2
    state_dim = 16
    action_dim = 8
    hidden = (32, 32)

    key = jax.random.PRNGKey(0)
    kx, ku, kp = jax.random.split(key, 3)
    x = jax.random.normal(kx, (batch, state_dim), jnp.float32)
    u = jax.random.normal(ku, (batch, action_dim), jnp.float32)
    params = init_critic_params(kp, state_dim, action_dim, hidden)

    q = critic_forward(x, u, params)
    q = jax.block_until_ready(q)

    # Pure-JAX f32 reference of the same math (kernel uses bf16 matmul inputs
    # with f32 accumulation, so tolerance is relaxed accordingly).
    w1, b1, w2, b2, w3, b3 = params
    xu = jnp.concatenate([x, u], axis=1)
    ref = jnp.maximum(xu @ w1 + b1, 0.0)
    ref = jnp.maximum(ref @ w2 + b2, 0.0)
    ref = ref @ w3 + b3
    assert q.shape == (batch, 1)
    assert jnp.allclose(q, ref, atol=5e-2, rtol=5e-2), (q, ref)

    print("KERNEL_OK")
</pallas_src>

<mosaic_0001>
module attributes {stable_mosaic.version = 11 : i64} {
  func.func @critic_kernel(%arg0: i32, %arg1: memref<8x16xf32, #tpu.memory_space<vmem>>, %arg2: memref<8x8xf32, #tpu.memory_space<vmem>>, %arg3: memref<16x32xbf16, #tpu.memory_space<vmem>>, %arg4: memref<8x32xbf16, #tpu.memory_space<vmem>>, %arg5: memref<1x32xf32, #tpu.memory_space<vmem>>, %arg6: memref<32x32xbf16, #tpu.memory_space<vmem>>, %arg7: memref<1x32xf32, #tpu.memory_space<vmem>>, %arg8: memref<1x32xf32, #tpu.memory_space<vmem>>, %arg9: memref<1x1xf32, #tpu.memory_space<smem>>, %arg10: memref<8x1xf32, #tpu.memory_space<vmem>>) attributes {dimension_semantics = [#tpu.dimension_semantics<parallel>], iteration_bounds = array<i64: 1>, scalar_prefetch = 0 : i64, scratch_operands = 0 : i64, tpu.core_type = #tpu.core_type<tc>, window_params = [{transform_indices = @transform_0, window_bounds = array<i64: 8, 16>}, {transform_indices = @transform_1, window_bounds = array<i64: 8, 8>}, {pipeline_mode = #tpu.pipeline_mode<synchronous>, transform_indices = @transform_2, window_bounds = array<i64: 16, 32>}, {pipeline_mode = #tpu.pipeline_mode<synchronous>, transform_indices = @transform_3, window_bounds = array<i64: 8, 32>}, {pipeline_mode = #tpu.pipeline_mode<synchronous>, transform_indices = @transform_4, window_bounds = array<i64: 1, 32>}, {pipeline_mode = #tpu.pipeline_mode<synchronous>, transform_indices = @transform_5, window_bounds = array<i64: 32, 32>}, {pipeline_mode = #tpu.pipeline_mode<synchronous>, transform_indices = @transform_6, window_bounds = array<i64: 1, 32>}, {pipeline_mode = #tpu.pipeline_mode<synchronous>, transform_indices = @transform_7, window_bounds = array<i64: 1, 32>}, {transform_indices = @transform_8, window_bounds = array<i64: 1, 1>}, {transform_indices = @transform_9, window_bounds = array<i64: 8, 1>}]} {
    %c0 = arith.constant 0 : index
    %c0_0 = arith.constant 0 : index
    %0 = vector.load %arg1[%c0, %c0_0] : memref<8x16xf32, #tpu.memory_space<vmem>>, vector<8x16xf32>
    %1 = arith.truncf %0 : vector<8x16xf32> to vector<8x16xbf16>
    %c0_1 = arith.constant 0 : index
    %c0_2 = arith.constant 0 : index
    %2 = vector.load %arg2[%c0_1, %c0_2] : memref<8x8xf32, #tpu.memory_space<vmem>>, vector<8x8xf32>
    %3 = arith.truncf %2 : vector<8x8xf32> to vector<8x8xbf16>
    %c0_3 = arith.constant 0 : index
    %c0_4 = arith.constant 0 : index
    %4 = vector.load %arg3[%c0_3, %c0_4] : memref<16x32xbf16, #tpu.memory_space<vmem>>, vector<16x32xbf16>
    %cst = arith.constant dense<0.000000e+00> : vector<8x32xf32>
    %5 = tpu.matmul %1, %4, %cst {dimension_numbers = #tpu.dot_dimension_numbers<[1], [0], [0], [1], [0, 0, 1, 1], [], []>} : vector<8x16xbf16>, vector<16x32xbf16>, vector<8x32xf32> -> vector<8x32xf32>
    %c0_5 = arith.constant 0 : index
    %c0_6 = arith.constant 0 : index
    %6 = vector.load %arg4[%c0_5, %c0_6] : memref<8x32xbf16, #tpu.memory_space<vmem>>, vector<8x32xbf16>
    %cst_7 = arith.constant dense<0.000000e+00> : vector<8x32xf32>
    %7 = tpu.matmul %3, %6, %cst_7 {dimension_numbers = #tpu.dot_dimension_numbers<[1], [0], [0], [1], [0, 0, 1, 1], [], []>} : vector<8x8xbf16>, vector<8x32xbf16>, vector<8x32xf32> -> vector<8x32xf32>
    %8 = arith.addf %5, %7 : vector<8x32xf32>
    %c0_8 = arith.constant 0 : index
    %c0_9 = arith.constant 0 : index
    %9 = vector.load %arg5[%c0_8, %c0_9] : memref<1x32xf32, #tpu.memory_space<vmem>>, vector<1x32xf32>
    %10 = vector.broadcast %9 : vector<1x32xf32> to vector<8x32xf32>
    %11 = arith.addf %8, %10 : vector<8x32xf32>
    %cst_10 = arith.constant 0.000000e+00 : f32
    %12 = vector.broadcast %cst_10 : f32 to vector<8x32xf32>
    %13 = arith.maximumf %11, %12 : vector<8x32xf32>
    %14 = arith.truncf %13 : vector<8x32xf32> to vector<8x32xbf16>
    %c0_11 = arith.constant 0 : index
    %c0_12 = arith.constant 0 : index
    %15 = vector.load %arg6[%c0_11, %c0_12] : memref<32x32xbf16, #tpu.memory_space<vmem>>, vector<32x32xbf16>
    %cst_13 = arith.constant dense<0.000000e+00> : vector<8x32xf32>
    %16 = tpu.matmul %14, %15, %cst_13 {dimension_numbers = #tpu.dot_dimension_numbers<[1], [0], [0], [1], [0, 0, 1, 1], [], []>} : vector<8x32xbf16>, vector<32x32xbf16>, vector<8x32xf32> -> vector<8x32xf32>
    %c0_14 = arith.constant 0 : index
    %c0_15 = arith.constant 0 : index
    %17 = vector.load %arg7[%c0_14, %c0_15] : memref<1x32xf32, #tpu.memory_space<vmem>>, vector<1x32xf32>
    %18 = vector.broadcast %17 : vector<1x32xf32> to vector<8x32xf32>
    %19 = arith.addf %16, %18 : vector<8x32xf32>
    %cst_16 = arith.constant 0.000000e+00 : f32
    %20 = vector.broadcast %cst_16 : f32 to vector<8x32xf32>
    %21 = arith.maximumf %19, %20 : vector<8x32xf32>
    %c0_17 = arith.constant 0 : index
    %c0_18 = arith.constant 0 : index
    %22 = vector.load %arg8[%c0_17, %c0_18] : memref<1x32xf32, #tpu.memory_space<vmem>>, vector<1x32xf32>
    %23 = vector.broadcast %22 : vector<1x32xf32> to vector<8x32xf32>
    %24 = arith.mulf %21, %23 : vector<8x32xf32>
    %cst_19 = arith.constant dense<0.000000e+00> : vector<8xf32>
    %25 = vector.multi_reduction <add>, %24, %cst_19 [1] : vector<8x32xf32> to vector<8xf32>
    %26 = vector.shape_cast %25 : vector<8xf32> to vector<8x1xf32>
    %c0_20 = arith.constant 0 : index
    %c0_21 = arith.constant 0 : index
    %27 = memref.load %arg9[%c0_20, %c0_21] : memref<1x1xf32, #tpu.memory_space<smem>>
    %28 = vector.broadcast %27 : f32 to vector<8x1xf32>
    %29 = arith.addf %26, %28 : vector<8x1xf32>
    %c0_22 = arith.constant 0 : index
    %c0_23 = arith.constant 0 : index
    %30 = vector.load %arg10[%c0_22, %c0_23] : memref<8x1xf32, #tpu.memory_space<vmem>>, vector<8x1xf32>
    tpu.vector_store %arg10[%c0_22, %c0_23], %29 {strides = array<i32>} : memref<8x1xf32, #tpu.memory_space<vmem>>, vector<8x1xf32>,
    return
  }
  func.func @transform_0(%arg0: i32) -> (i32, i32) {
    %c0_i32 = arith.constant 0 : i32
    %c0_i32_0 = arith.constant 0 : i32
    return %arg0, %c0_i32 : i32, i32
  }
  func.func @transform_1(%arg0: i32) -> (i32, i32) {
    %c0_i32 = arith.constant 0 : i32
    %c0_i32_0 = arith.constant 0 : i32
    return %arg0, %c0_i32 : i32, i32
  }
  func.func @transform_2(%arg0: i32) -> (i32, i32) {
    %c0_i32 = arith.constant 0 : i32
    %c0_i32_0 = arith.constant 0 : i32
    %c0_i32_1 = arith.constant 0 : i32
    return %c0_i32, %c0_i32_0 : i32, i32
  }
  func.func @transform_3(%arg0: i32) -> (i32, i32) {
    %c0_i32 = arith.constant 0 : i32
    %c0_i32_0 = arith.constant 0 : i32
    %c0_i32_1 = arith.constant 0 : i32
    return %c0_i32, %c0_i32_0 : i32, i32
  }
  func.func @transform_4(%arg0: i32) -> (i32, i32) {
    %c0_i32 = arith.constant 0 : i32
    %c0_i32_0 = arith.constant 0 : i32
    %c0_i32_1 = arith.constant 0 : i32
    return %c0_i32, %c0_i32_0 : i32, i32
  }
  func.func @transform_5(%arg0: i32) -> (i32, i32) {
    %c0_i32 = arith.constant 0 : i32
    %c0_i32_0 = arith.constant 0 : i32
    %c0_i32_1 = arith.constant 0 : i32
    return %c0_i32, %c0_i32_0 : i32, i32
  }
  func.func @transform_6(%arg0: i32) -> (i32, i32) {
    %c0_i32 = arith.constant 0 : i32
    %c0_i32_0 = arith.constant 0 : i32
    %c0_i32_1 = arith.constant 0 : i32
    return %c0_i32, %c0_i32_0 : i32, i32
  }
  func.func @transform_7(%arg0: i32) -> (i32, i32) {
    %c0_i32 = arith.constant 0 : i32
    %c0_i32_0 = arith.constant 0 : i32
    %c0_i32_1 = arith.constant 0 : i32
    return %c0_i32, %c0_i32_0 : i32, i32
  }
  func.func @transform_8(%arg0: i32) -> (i32, i32) {
    %c0_i32 = arith.constant 0 : i32
    %c0_i32_0 = arith.constant 0 : i32
    %c0_i32_1 = arith.constant 0 : i32
    return %c0_i32, %c0_i32_0 : i32, i32
  }
  func.func @transform_9(%arg0: i32) -> (i32, i32) {
    %c0_i32 = arith.constant 0 : i32
    %c0_i32_0 = arith.constant 0 : i32
    return %arg0, %c0_i32 : i32, i32
  }
}

</mosaic_0001>

<bundles_post_ra>
// kernel: tpu_custom_call.1
= control target key start
LH: loop header
LB: loop body
LE: loop exit
PB: predicated region body
PF: predicated region fallthrough
CT: control target
= control target key end

     0   :  { %15 = vsyncpa [#allocation4], 0  ;;  %s553_s0 = inlined_call_operand.vmem [shape: f32[2,16], index: 0, kind: input, shape index: {}]   ;;  %s554_s1 = inlined_call_operand.hbm [shape: f32[2,8], index: 1, kind: input, shape index: {}]   ;;  %s555_s2 = inlined_call_operand.hbm [shape: bf16[16,32], index: 2, kind: input, shape index: {}]   ;;  %s556_s3 = inlined_call_operand.vmem [shape: bf16[8,32], index: 3, kind: input, shape index: {}]   ;;  %s557_s4 = inlined_call_operand.hbm [shape: f32[1,32], index: 4, kind: input, shape index: {}]   ;;  %s558_s5 = inlined_call_operand.vmem [shape: bf16[32,32], index: 5, kind: input, shape index: {}]   ;;  %s559_s6 = inlined_call_operand.vmem [shape: f32[1,32], index: 6, kind: input, shape index: {}]   ;;  %s560_s7 = inlined_call_operand.vmem [shape: f32[1,32], index: 7, kind: input, shape index: {}]   ;;  %s561_s8 = inlined_call_operand.<no memory space> [shape: f32[1,1], index: 8, kind: input, shape index: {}]   ;;  %s562_s9 = inlined_call_operand.vmem [shape: f32[2,1], index: 9, kind: output, shape index: {}]  }
   0x1   :  { %16 = vsyncpa [#allocation6], 0 }
   0x2   :  { %23 = vsyncadd [#allocation4], 96  ;;  %s431_s30 = smov [#allocation5]   ;;  %s361_s13 = scalar_lea.hbm %s555_s2, 128 }
   0x3   :  { %s36_s10 = sshll.u32 %s431_s30, 4  ;;  %p362_p0 = scmp.ne.s32.totalorder %s555_s2, %s361_s13  ;;  %s37_s10 = int_to_ptr.vmem [resolvable:$true] %s36_s10 }
   0x4   :  { %p365_p1 = scmp.lt.u32.totalorder %s361_s13, %s555_s2 }
   0x6   :  { %p367_p2 = pnand %p365_p1, %p362_p0 }
   0x8   :  { %370 = shalt.err (!%p367_p2)
}
   0x9   :  { %s371_s18 = scalar_lea.vmem %s37_s10, 128  ;;  %p376_p4 = scmp.lt.s32.totalorder %s37_s10, %s37_s10 }
   0xa   :  { %p372_p3 = scmp.ne.s32.totalorder %s37_s10, %s371_s18  ;;  %p377_p5 = scmp.lt.s32.totalorder %s371_s18, %s371_s18 }
   0xc   :  { %p378_p6 = por %p377_p5, %p376_p4 }
   0xe   :  { %p379_p7 = pnand %p378_p6, %p372_p3 }
  0x10   :  { %382 = shalt.err (!%p379_p7)
}
  0x11   :  { %s432_s19 = smov 64   ;;  %s433_s20 = smov 4  }
  0x12   :  { %42 = dma.hbm_to_vmem [thread:$0]  %s555_s2, 128, %s37_s10, [#allocation6], %s432_s19, %s432_s19, %s433_s20  }
  0x13   :  { %s434_s23 = smov [#allocation3]   ;;  %s383_s27 = scalar_lea.hbm %s554_s1, 32 }
  0x14   :  { %s24_s24 = sshll.u32 %s434_s23, 4  ;;  %p384_p8 = scmp.ne.s32.totalorder %s554_s1, %s383_s27  ;;  %s25_s24 = int_to_ptr.vmem [resolvable:$true] %s24_s24 }
  0x15   :  { %p387_p9 = scmp.lt.u32.totalorder %s383_s27, %s554_s1 }
  0x17   :  { %p389_p10 = pnand %p387_p9, %p384_p8 }
  0x19   :  { %392 = shalt.err (!%p389_p10)
}
  0x1a   :  { %s393_s12 = scalar_lea.vmem %s25_s24, 32  ;;  %s397_s2 = scalar_lea.vmem %s25_s24, 128 }
  0x1b   :  { %p394_p11 = scmp.ne.s32.totalorder %s25_s24, %s393_s12  ;;  %p398_p12 = scmp.lt.s32.totalorder %s25_s24, %s25_s24 }
  0x1c   :  { %p399_p13 = scmp.lt.s32.totalorder %s397_s2, %s393_s12 }
  0x1e   :  { %p400_p0 = por %p399_p13, %p398_p12 }
  0x20   :  { %p401_p1 = pnand %p400_p0, %p394_p11 }
  0x22   :  { %404 = shalt.err (!%p401_p1)
}
  0x23   :  { %s435_s10 = smov 32   ;;  %s436_s13 = smov 2  }
  0x24   :  { %30 = dma.hbm_to_vmem [thread:$0]  %s554_s1, 32, %s25_s24, [#allocation4], %s435_s10, %s435_s10, %s436_s13  }
  0x25   :  { %s437_s16 = smov [#allocation7]   ;;  %s405_s20 = scalar_lea.hbm %s557_s4, 16 }
  0x26   :  { %s51_s17 = sshll.u32 %s437_s16, 4  ;;  %p406_p2 = scmp.ne.s32.totalorder %s557_s4, %s405_s20  ;;  %s52_s17 = int_to_ptr.vmem [resolvable:$true] %s51_s17 }
  0x27   :  { %p409_p3 = scmp.lt.u32.totalorder %s405_s20, %s557_s4 }
  0x29   :  { %p411_p4 = pnand %p409_p3, %p406_p2 }
  0x2b   :  { %414 = shalt.err (!%p411_p4)
}
  0x2c   :  { %s415_s26 = scalar_lea.vmem %s52_s17, 16  ;;  %s419_s1 = scalar_lea.vmem %s52_s17, 32 }
  0x2d   :  { %p416_p5 = scmp.ne.s32.totalorder %s52_s17, %s415_s26  ;;  %p420_p6 = scmp.lt.s32.totalorder %s52_s17, %s52_s17 }
  0x2e   :  { %p421_p7 = scmp.lt.s32.totalorder %s419_s1, %s415_s26 }
  0x30   :  { %p422_p8 = por %p421_p7, %p420_p6 }
  0x32   :  { %p423_p9 = pnand %p422_p8, %p416_p5 }
  0x34   :  { %426 = shalt.err (!%p423_p9)
}
  0x35   :  { %54 = dma.hbm_to_vmem [thread:$0]  %s557_s4, 16, %s52_s17, [#allocation6]  }
  0x36   :  { %427 = dma.done.wait [#allocation4], 128  }
  0x37   :  { %428 = vsyncadd [#allocation4], 4294967168 }
  0x38   :  { %429 = dma.done.wait [#allocation6], 144  }
  0x39   :  { %430 = vsyncadd [#allocation6], 4294967152  ;;  %v438_v0 = vmov 0.0   ;;  %vm439_vm0 = vmmov 0   ;;  %vm84_vm1 = vcmask 1043456   ;;  %v358_v3 = vld [vmem:[#allocation5] sm:$0xff]   ;;  %v268_v33 = vstv %s561_s8 }
  0x3a   :  { %329 = vmatprep.subr.bf16.mxu0 %v438_v0  ;;  %335 = vmatprep.subr.bf16.mxu1 %v438_v0  ;;  %v79_v1 = vld [vmem:[%s556_s3] sm:$0xf]  ;;  %vm80_vm2 = vcmask 64512   ;;  %vm134_vm3 = vcmask 130048   ;;  %v360_v9 = vld [vmem:[%s558_s5 + $0x8] sm:$0xff]   ;;  %vm211_vm4 = vcmask 261120  }
  0x3b   :  { %331 = vmatprep.mubr.msk.bf16.mxu0 %vm439_vm0, %v438_v0  ;;  %337 = vmatprep.mubr.msk.bf16.mxu1 %vm439_vm0, %v438_v0  ;;  %v86_v2 = vsel %vm84_vm1, %v79_v1, 0  ;;  %v75_v4 = vld [vmem:[#allocation3] sm:$0xff]  ;;  %v316_v13 = vld [vmem:[#allocation7] ss:$0 sm:$0xff]  ;;  %vm270_vm5 = vcmask 7168  }
  0x3c   :  { %v73_v5 = vld [vmem:[%s553_s0] sm:$0xff]  ;;  %330 = vmatpush3.bf16.msra.mxu0 %v86_v2  ;;  %v76_v6 = vpack.c.bf16 %v75_v4, %v75_v4  ;;  %336 = vmatpush3.bf16.msra.mxu1 %v358_v3 }
  0x3d   :  { %v74_v7 = vpack.c.bf16 %v73_v5, %v73_v5  ;;  %341 = vmatprep.subr.bf16.mxu0 %v438_v0  ;;  %v359_v8 = vld [vmem:[%s558_s5] sm:$0xff]  }
  0x3e   :  { %v317_v23 = vld [vmem:[%s559_s6] ss:$0 sm:$0xff] }
  0x3f   :  { %332 = vmatmul.mubr.msk.bf16.vlgmr.msra.gmra.mrb[0].mxu0 %vm80_vm2, %v76_v6  ;;  %338 = vmatmul.mubr.msk.bf16.vlgmr.msra.gmra.mrb[0].mxu1 %vm134_vm3, %v74_v7  ;;  %v321_v28 = vld [vmem:[%s560_s7] ss:$0 sm:$0xff] }
  0x40   :  { %345 = vmatprep.mubr.msk.bf16.mxu0 %vm439_vm0, %v438_v0  ;;  %342 = vmatpush3.bf16.msra.mxu0 %v359_v8 }
  0x41   :  { %343 = vmatprep.subr.bf16.mxu0 %v438_v0 }
  0x44   :  { %344 = vmatpush3.bf16.msra.mxu0 %v360_v9 }
 0x112   :  { %v122_v10 = vpop.f32.mrb[0].mxu0  ;;  %v172_v12 = vpop.f32.mrb[0].mxu1 }
 0x113   :  { %v333_v11 = vpop.f32.mrb[1].mxu0  ;;  %v173_v14 = vadd.f32 %v172_v12, %v122_v10  ;;  %v339_v16 = vpop.f32.mrb[1].mxu1 }
 0x114   :  { %v125_v15 = vpop.f32.mrb[2].mxu0  ;;  %v175_v18 = vpop.f32.mrb[2].mxu1 }
 0x115   :  { %v334_v17 = vpop.f32.mrb[3].mxu0  ;;  %v185_v19 = vadd.f32 %v316_v13, %v173_v14  ;;  %v340_v20 = vpop.f32.mrb[3].mxu1 }
 0x117   :  { %v186_v21 = vmax.f32 %v185_v19, 0.0 }
 0x119   :  { %v187_v22 = vpack.c.bf16 %v186_v21, %v186_v21 }
 0x11b   :  { %346 = vmatmul.mubr.msk.bf16.vlgmr.msra.gmra.mrb[4].mxu0 %vm211_vm4, %v187_v22 }
 0x1ee   :  { %v249_v24 = vpop.f32.mrb[4].mxu0 }
 0x1ef   :  { %v250_v25 = vadd.f32 %v317_v23, %v249_v24  ;;  %v347_v26 = vpop.f32.mrb[5].mxu0 }
 0x1f0   :  { %v252_v27 = vpop.f32.mrb[6].mxu0 }
 0x1f1   :  { %v255_v29 = vmax.f32 %v250_v25, 0.0  ;;  %v348_v30 = vpop.f32.mrb[7].mxu0 }
 0x1f3   :  { %v263_v31 = vmul.f32 %v321_v28, %v255_v29 }
 0x1f5   :  { %v264_v32 = vsel %vm211_vm4, %v263_v31, 0.0 }
 0x1f6   :  { %265 = vadd.xlane.f32.xlu0 %v264_v32 }
 0x283   :  { %v266_v34 = vpop.xlane.xlu0 %265 }
 0x284   :  { %v269_v35 = vadd.f32 %v268_v33, %v266_v34 }
 0x286   :  { %271 = vst.msk [vmem:[#allocation8] sm:$0xff] %vm270_vm5, %v269_v35 }
 0x28d   :  { %v289_v36 = vld [vmem:[#allocation8] sm:$0x3] }
 0x28e   :  { %290 = vst [vmem:[%s562_s9] sm:$0x3] %v289_v36 }
 0x28f   :  { %307 = vsyncpa [#allocation4], 1 }
 0x290   :  { %308 = vsyncpa [#allocation6], 1 }

</bundles_post_ra>
